<compile_context>
chip_gen: v6e
topology: v6e:2x2x1
jax: 0.10.0
libtpu: 0.0.40
codegen_flags: <defaults>
</compile_context>

<pallas_src>
import functools

import jax
import jax.numpy as jnp
from jax.experimental import pallas as pl
from jax.experimental.pallas import tpu as pltpu


def _accuracy_kernel(pred_ref, tgt_ref, out_ref, acc_ref, *,
                     topk, thresh, hw, nb_total, nbs, upcast):
    """pred_ref: (C, TM) native dtype; tgt_ref: (1, TM) i32;
    out_ref: (num_k, 1) i32 per-(image, split) counts;
    acc_ref: (num_k, TM) i32 scratch."""
    s = pl.program_id(1)   # pixel-range split (extra parallel axis)
    i = pl.program_id(2)   # pixel block within the split (reduction axis)

    # Reset the per-lane partial counts at the start of every (image, split).
    @pl.when(i == 0)
    def _():
        acc_ref[...] = jnp.zeros_like(acc_ref)

    p = pred_ref[...]
    if upcast:                       # v5e: single upfront upcast (no bf16 VALU)
        p = p.astype(jnp.float32)
    t = tgt_ref[...]                 # (1, TM) int32
    C, TM = p.shape

    # (C, 1) class iota; broadcasts against the (1, TM) target without ever
    # materializing a (C, TM) int32 array.
    iota_c = jax.lax.broadcasted_iota(jnp.int32, (C, 1), 0)

    # Score of the target class per pixel (-inf if target out of range).
    neg_inf = jnp.array(-jnp.inf, dtype=p.dtype)
    t_val = jnp.max(jnp.where(iota_c == t, p, neg_inf), axis=0, keepdims=True)

    # Rank of the target class under torch.topk ordering (first occurrence
    # wins ties): strictly-greater classes + equal classes with lower index.
    ahead = jnp.logical_or(p > t_val,
                           jnp.logical_and(p == t_val, iota_c < t))
    rank = jnp.sum(ahead.astype(jnp.int32), axis=0, keepdims=True)    # (1, TM)

    # Valid-pixel gate: real (non-padded) block, inside the image, and target
    # in [0, C).  Optional threshold gate on the target's score (in f32).
    gb = s * nbs + i                 # global pixel-block index
    lane = jax.lax.broadcasted_iota(jnp.int32, (1, TM), 1)
    gate = (gb * TM + lane) < hw
    gate = jnp.logical_and(gate, gb < nb_total)
    gate = jnp.logical_and(gate, jnp.logical_and(t >= 0, t < C))
    if thresh is not None:
        gate = jnp.logical_and(gate,
                               t_val.astype(jnp.float32) > jnp.float32(thresh))

    corr = jnp.concatenate(
        [jnp.logical_and(rank < k, gate).astype(jnp.int32) for k in topk],
        axis=0)                                                       # (num_k, TM)
    acc_ref[...] = acc_ref[...] + corr

    # Single cross-lane reduction + output store, once per (image, split).
    @pl.when(i == pl.num_programs(2) - 1)
    def _():
        out_ref[...] = jnp.sum(acc_ref[...], axis=1, keepdims=True)   # (num_k, 1)


def _physical_vmem_bytes():
    try:
        return int(pltpu.get_tpu_info().vmem_capacity_bytes)
    except Exception:
        return 64 * 1024 * 1024          # v7x-conservative fallback


def _is_v5_device():
    try:
        return "v5" in jax.devices()[0].device_kind.lower()
    except Exception:
        return False


def accuracy_pallas(pred, target, topk=(1,), thresh=None, block_m=None):
    """JAX/Pallas equivalent of mmseg.models.losses.accuracy.accuracy."""
    assert isinstance(topk, (int, tuple))
    if isinstance(topk, int):
        topk = (topk,)
        return_single = True
    else:
        return_single = False
    maxk = max(topk)

    if pred.shape[0] == 0:
        accu = [jnp.float32(0.0) for _ in range(len(topk))]
        return accu[0] if return_single else accu

    assert pred.ndim == target.ndim + 1
    assert pred.shape[0] == target.shape[0]
    N, C = int(pred.shape[0]), int(pred.shape[1])
    assert maxk <= C, f"maxk {maxk} exceeds pred dimension {C}"

    HW = 1
    for s in pred.shape[2:]:
        HW *= int(s)
    M = N * HW  # == target.size
    num_k = len(topk)

    # Free reshapes only: NCHW already has classes sublane-adjacent, pixels on
    # lanes; stream pred in its native dtype (bf16 stays bf16).
    p3 = pred.reshape(N, C, HW)
    t3 = target.reshape(N, 1, HW).astype(jnp.int32)

    # v5e has no bf16 VALU: do one upfront upcast there; native dtype elsewhere.
    upcast = (jnp.dtype(p3.dtype) != jnp.dtype(jnp.float32)) and _is_v5_device()

    # Generation-aware VMEM budget (v7x: 64 MiB physical; v5e/v6e: 128 MiB).
    phys_vmem = _physical_vmem_bytes()
    vmem_limit = min(48 * 1024 * 1024, (phys_vmem * 55) // 100)

    # Bytes-budgeted lane tile: double-buffered pred/target blocks, the int32
    # scratch rows, and a conservative estimate of the (C, TM) body temporaries.
    if block_m is None:
        itemsize = jnp.dtype(p3.dtype).itemsize
        bytes_per_lane = C * (3 * itemsize + 8) + 8 + 4 * num_k
        budget = vmem_limit // 2
        block_m = budget // bytes_per_lane
    block_m = int(block_m)
    block_m = max(128, min(block_m, 32768))
    block_m = min(block_m, ((HW + 127) // 128) * 128)   # don't exceed per-image pixels
    block_m = max(128, (block_m // 128) * 128)

    nb_total = -(-HW // block_m)                 # pixel blocks per image
    num_splits = 2 if nb_total >= 2 else 1       # keep both v7x TCs busy at N==1
    nbs = -(-nb_total // num_splits)             # blocks per split

    kern = functools.partial(_accuracy_kernel, topk=tuple(topk), thresh=thresh,
                             hw=HW, nb_total=nb_total, nbs=nbs, upcast=upcast)

    # Clamp padded block indices in the index_map (masked off in-kernel).
    def in_map(n, s, i):
        return (n, 0, jnp.minimum(s * nbs + i, nb_total - 1))

    def out_map(n, s, i):
        return (n, s, 0, 0)

    counts = pl.pallas_call(
        kern,
        out_shape=jax.ShapeDtypeStruct((N, num_splits, num_k, 1), jnp.int32),
        grid=(N, num_splits, nbs),
        in_specs=[
            pl.BlockSpec((None, C, block_m), in_map),
            pl.BlockSpec((None, 1, block_m), in_map),
        ],
        out_specs=pl.BlockSpec((None, None, num_k, 1), out_map),
        scratch_shapes=[pltpu.VMEM((num_k, block_m), jnp.int32)],
        compiler_params=pltpu.CompilerParams(
            dimension_semantics=("parallel", "parallel", "arbitrary"),
            vmem_limit_bytes=vmem_limit,
        ),
    )(p3, t3)

    total = jnp.sum(counts, axis=(0, 1, 3))          # (num_k,) exact int32 counts
    scale = jnp.float32(100.0 / M)
    res = [total[j].astype(jnp.float32) * scale for j in range(num_k)]
    return res[0] if return_single else res


class Accuracy:
    """Accuracy calculation module (Pallas-backed)."""

    def __init__(self, topk=(1,), thresh=None):
        self.topk = topk
        self.thresh = thresh

    def __call__(self, pred, target):
        return accuracy_pallas(pred, target, self.topk, self.thresh)


def _accuracy_ref(pred, target, topk=(1,), thresh=None):
    """Pure-JAX reference matching the PyTorch semantics."""
    if isinstance(topk, int):
        topk = (topk,)
    maxk = max(topk)
    C = pred.shape[1]
    perm = (0,) + tuple(range(2, pred.ndim)) + (1,)
    pm = jnp.transpose(pred, perm).reshape(-1, C).astype(jnp.float32)
    tm = target.reshape(-1)
    vals, labs = jax.lax.top_k(pm, maxk)                # (M, maxk)
    corr = labs == tm[:, None]
    if thresh is not None:
        corr = jnp.logical_and(corr, vals > thresh)
    res = []
    for k in topk:
        res.append(jnp.sum(corr[:, :k].astype(jnp.float32)) * (100.0 / tm.size))
    return res


if __name__ == "__main__":
    key = jax.random.PRNGKey(0)
    kp, kt, kp2, kt2 = jax.random.split(key, 4)

    N, C, H, W = 2, 4, 16, 16
    pred = jax.random.normal(kp, (N, C, H, W), dtype=jnp.float32)
    target = jax.random.randint(kt, (N, H, W), 0, C, dtype=jnp.int32)

    # 1) top-k accuracy without threshold (single pixel block per image).
    acc_mod = Accuracy(topk=(1, 2))
    out = acc_mod(pred, target)
    out = [jax.block_until_ready(o) for o in out]
    ref = _accuracy_ref(pred, target, topk=(1, 2))
    for o, r in zip(out, ref):
        assert abs(float(o) - float(r)) < 1e-3, (float(o), float(r))

    # 2) top-k accuracy with threshold.
    acc_mod_th = Accuracy(topk=(1, 3), thresh=0.5)
    out_th = acc_mod_th(pred, target)
    out_th = [jax.block_until_ready(o) for o in out_th]
    ref_th = _accuracy_ref(pred, target, topk=(1, 3), thresh=0.5)
    for o, r in zip(out_th, ref_th):
        assert abs(float(o) - float(r)) < 1e-3, (float(o), float(r))

    # 3) bf16 logits, int topk, non-divisible spatial size and a forced small
    #    block so the pixel-split axis, the clamped padded block, and the
    #    partial-block lane mask are all exercised on the native-dtype path.
    N2, C2, H2, W2 = 2, 5, 16, 20
    pred_bf = jax.random.normal(kp2, (N2, C2, H2, W2), dtype=jnp.float32).astype(jnp.bfloat16)
    target2 = jax.random.randint(kt2, (N2, H2, W2), 0, C2, dtype=jnp.int32)
    out_bf = accuracy_pallas(pred_bf, target2, topk=1, thresh=None, block_m=128)
    out_bf = jax.block_until_ready(out_bf)
    ref_bf = _accuracy_ref(pred_bf.astype(jnp.float32), target2, topk=(1,))[0]
    assert abs(float(out_bf) - float(ref_bf)) < 1e-3, (float(out_bf), float(ref_bf))

    print("KERNEL_OK")
</pallas_src>

<mosaic_0001>
module attributes {stable_mosaic.version = 11 : i64} {
  func.func @_accuracy_kernel(%arg0: i32, %arg1: i32, %arg2: i32, %arg3: memref<1x4x256xf32, #tpu.memory_space<vmem>>, %arg4: memref<1x1x256xi32, #tpu.memory_space<vmem>>, %arg5: memref<1x1x2x1xi32, #tpu.memory_space<vmem>>, %arg6: memref<2x256xi32, #tpu.memory_space<vmem>>) attributes {dimension_semantics = [#tpu.dimension_semantics<parallel>, #tpu.dimension_semantics<parallel>, #tpu.dimension_semantics<arbitrary>], iteration_bounds = array<i64: 2, 1, 1>, scalar_prefetch = 0 : i64, scratch_operands = 1 : i64, tpu.core_type = #tpu.core_type<tc>, window_params = [{transform_indices = @transform_0, window_bounds = array<i64: 1, 4, 256>}, {transform_indices = @transform_1, window_bounds = array<i64: 1, 1, 256>}, {transform_indices = @transform_2, window_bounds = array<i64: 1, 1, 2, 1>}]} {
    %c0_i32 = arith.constant 0 : i32
    %0 = arith.cmpi eq, %arg2, %c0_i32 : i32
    %1 = arith.extui %0 : i1 to i32
    %c0_i32_0 = arith.constant 0 : i32
    %2 = arith.cmpi ne, %1, %c0_i32_0 : i32
    scf.if %2 {
      %c0_i32_18 = arith.constant 0 : i32
      %59 = vector.broadcast %c0_i32_18 : i32 to vector<2x256xi32>
      %c0_19 = arith.constant 0 : index
      %c0_20 = arith.constant 0 : index
      %60 = vector.load %arg6[%c0_19, %c0_20] : memref<2x256xi32, #tpu.memory_space<vmem>>, vector<2x256xi32>
      tpu.vector_store %arg6[%c0_19, %c0_20], %59 {strides = array<i32>} : memref<2x256xi32, #tpu.memory_space<vmem>>, vector<2x256xi32>,
    } else {
    }
    %c0 = arith.constant 0 : index
    %c0_1 = arith.constant 0 : index
    %c0_2 = arith.constant 0 : index
    %3 = vector.load %arg3[%c0, %c0_1, %c0_2] : memref<1x4x256xf32, #tpu.memory_space<vmem>>, vector<1x4x256xf32>
    %4 = vector.shape_cast %3 : vector<1x4x256xf32> to vector<4x256xf32>
    %c0_3 = arith.constant 0 : index
    %c0_4 = arith.constant 0 : index
    %c0_5 = arith.constant 0 : index
    %5 = vector.load %arg4[%c0_3, %c0_4, %c0_5] : memref<1x1x256xi32, #tpu.memory_space<vmem>>, vector<1x1x256xi32>
    %6 = vector.shape_cast %5 : vector<1x1x256xi32> to vector<1x256xi32>
    %7 = tpu.iota {dimensions = array<i32: 0>} : vector<4x1xi32>
    %8 = vector.broadcast %7 : vector<4x1xi32> to vector<4x256xi32>
    %9 = vector.broadcast %6 : vector<1x256xi32> to vector<4x256xi32>
    %10 = arith.cmpi eq, %8, %9 : vector<4x256xi32>
    %cst = arith.constant 0xFF800000 : f32
    %11 = vector.broadcast %cst : f32 to vector<4x256xf32>
    %12 = arith.select %10, %4, %11 : vector<4x256xi1>, vector<4x256xf32>
    %cst_6 = arith.constant dense<0xFF800000> : vector<256xf32>
    %13 = vector.multi_reduction <maximumf>, %12, %cst_6 [0] : vector<4x256xf32> to vector<256xf32>
    %14 = vector.shape_cast %13 : vector<256xf32> to vector<1x256xf32>
    %15 = vector.broadcast %14 : vector<1x256xf32> to vector<4x256xf32>
    %16 = arith.cmpf ogt, %4, %15 : vector<4x256xf32>
    %17 = vector.broadcast %14 : vector<1x256xf32> to vector<4x256xf32>
    %18 = arith.cmpf oeq, %4, %17 : vector<4x256xf32>
    %19 = vector.broadcast %7 : vector<4x1xi32> to vector<4x256xi32>
    %20 = vector.broadcast %6 : vector<1x256xi32> to vector<4x256xi32>
    %21 = arith.cmpi slt, %19, %20 : vector<4x256xi32>
    %22 = arith.andi %18, %21 : vector<4x256xi1>
    %23 = arith.ori %16, %22 : vector<4x256xi1>
    %24 = arith.extui %23 : vector<4x256xi1> to vector<4x256xi32>
    %cst_7 = arith.constant dense<0> : vector<256xi32>
    %25 = vector.multi_reduction <add>, %24, %cst_7 [0] : vector<4x256xi32> to vector<256xi32>
    %26 = vector.shape_cast %25 : vector<256xi32> to vector<1x256xi32>
    %c1_i32 = arith.constant 1 : i32
    %27 = arith.muli %arg1, %c1_i32 : i32
    %28 = arith.addi %27, %arg2 : i32
    %29 = tpu.iota {dimensions = array<i32: 1>} : vector<1x256xi32>
    %c256_i32 = arith.constant 256 : i32
    %30 = arith.muli %28, %c256_i32 : i32
    %31 = vector.broadcast %30 : i32 to vector<1x256xi32>
    %32 = arith.addi %31, %29 : vector<1x256xi32>
    %c256_i32_8 = arith.constant 256 : i32
    %33 = vector.broadcast %c256_i32_8 : i32 to vector<1x256xi32>
    %34 = arith.cmpi slt, %32, %33 : vector<1x256xi32>
    %c1_i32_9 = arith.constant 1 : i32
    %35 = arith.cmpi slt, %28, %c1_i32_9 : i32
    %36 = vector.broadcast %35 : i1 to vector<1x256xi1>
    %37 = arith.andi %34, %36 : vector<1x256xi1>
    %c0_i32_10 = arith.constant 0 : i32
    %38 = vector.broadcast %c0_i32_10 : i32 to vector<1x256xi32>
    %39 = arith.cmpi sge, %6, %38 : vector<1x256xi32>
    %c4_i32 = arith.constant 4 : i32
    %40 = vector.broadcast %c4_i32 : i32 to vector<1x256xi32>
    %41 = arith.cmpi slt, %6, %40 : vector<1x256xi32>
    %42 = arith.andi %39, %41 : vector<1x256xi1>
    %43 = arith.andi %37, %42 : vector<1x256xi1>
    %c1_i32_11 = arith.constant 1 : i32
    %44 = vector.broadcast %c1_i32_11 : i32 to vector<1x256xi32>
    %45 = arith.cmpi slt, %26, %44 : vector<1x256xi32>
    %46 = arith.andi %45, %43 : vector<1x256xi1>
    %47 = arith.extui %46 : vector<1x256xi1> to vector<1x256xi32>
    %c2_i32 = arith.constant 2 : i32
    %48 = vector.broadcast %c2_i32 : i32 to vector<1x256xi32>
    %49 = arith.cmpi slt, %26, %48 : vector<1x256xi32>
    %50 = arith.andi %49, %43 : vector<1x256xi1>
    %51 = arith.extui %50 : vector<1x256xi1> to vector<1x256xi32>
    %52 = tpu.concatenate %47, %51 in 0 : vector<1x256xi32>, vector<1x256xi32> -> vector<2x256xi32>
    %c0_12 = arith.constant 0 : index
    %c0_13 = arith.constant 0 : index
    %53 = vector.load %arg6[%c0_12, %c0_13] : memref<2x256xi32, #tpu.memory_space<vmem>>, vector<2x256xi32>
    %54 = arith.addi %53, %52 : vector<2x256xi32>
    %c0_14 = arith.constant 0 : index
    %c0_15 = arith.constant 0 : index
    %55 = vector.load %arg6[%c0_14, %c0_15] : memref<2x256xi32, #tpu.memory_space<vmem>>, vector<2x256xi32>
    tpu.vector_store %arg6[%c0_14, %c0_15], %54 {strides = array<i32>} : memref<2x256xi32, #tpu.memory_space<vmem>>, vector<2x256xi32>,
    %c0_i32_16 = arith.constant 0 : i32
    %56 = arith.cmpi eq, %arg2, %c0_i32_16 : i32
    %57 = arith.extui %56 : i1 to i32
    %c0_i32_17 = arith.constant 0 : i32
    %58 = arith.cmpi ne, %57, %c0_i32_17 : i32
    scf.if %58 {
      %c0_18 = arith.constant 0 : index
      %c0_19 = arith.constant 0 : index
      %59 = vector.load %arg6[%c0_18, %c0_19] : memref<2x256xi32, #tpu.memory_space<vmem>>, vector<2x256xi32>
      %cst_20 = arith.constant dense<0> : vector<2xi32>
      %60 = vector.multi_reduction <add>, %59, %cst_20 [1] : vector<2x256xi32> to vector<2xi32>
      %61 = vector.shape_cast %60 : vector<2xi32> to vector<2x1xi32>
      %c0_21 = arith.constant 0 : index
      %c0_22 = arith.constant 0 : index
      %c0_23 = arith.constant 0 : index
      %c0_24 = arith.constant 0 : index
      %62 = vector.load %arg5[%c0_21, %c0_22, %c0_23, %c0_24] : memref<1x1x2x1xi32, #tpu.memory_space<vmem>>, vector<1x1x2x1xi32>
      %63 = vector.shape_cast %62 : vector<1x1x2x1xi32> to vector<2x1xi32>
      %64 = vector.shape_cast %61 : vector<2x1xi32> to vector<1x1x2x1xi32>
      tpu.vector_store %arg5[%c0_21, %c0_22, %c0_23, %c0_24], %64 {strides = array<i32>} : memref<1x1x2x1xi32, #tpu.memory_space<vmem>>, vector<1x1x2x1xi32>,
    } else {
    }
    return
  }
  func.func @transform_0(%arg0: i32, %arg1: i32, %arg2: i32) -> (i32, i32, i32) {
    %c1_i32 = arith.constant 1 : i32
    %0 = arith.muli %arg1, %c1_i32 : i32
    %1 = arith.addi %0, %arg2 : i32
    %c0_i32 = arith.constant 0 : i32
    %2 = arith.minsi %1, %c0_i32 : i32
    %c0_i32_0 = arith.constant 0 : i32
    %c0_i32_1 = arith.constant 0 : i32
    return %arg0, %c0_i32_0, %2 : i32, i32, i32
  }
  func.func @transform_1(%arg0: i32, %arg1: i32, %arg2: i32) -> (i32, i32, i32) {
    %c1_i32 = arith.constant 1 : i32
    %0 = arith.muli %arg1, %c1_i32 : i32
    %1 = arith.addi %0, %arg2 : i32
    %c0_i32 = arith.constant 0 : i32
    %2 = arith.minsi %1, %c0_i32 : i32
    %c0_i32_0 = arith.constant 0 : i32
    %c0_i32_1 = arith.constant 0 : i32
    return %arg0, %c0_i32_0, %2 : i32, i32, i32
  }
  func.func @transform_2(%arg0: i32, %arg1: i32, %arg2: i32) -> (i32, i32, i32, i32) {
    %c0_i32 = arith.constant 0 : i32
    %c0_i32_0 = arith.constant 0 : i32
    %c0_i32_1 = arith.constant 0 : i32
    return %arg0, %arg1, %c0_i32, %c0_i32_0 : i32, i32, i32, i32
  }
}

</mosaic_0001>

<bundles_post_ra>
// kernel: tpu_custom_call.1
= control target key start
LH: loop header
LB: loop body
LE: loop exit
PB: predicated region body
PF: predicated region fallthrough
CT: control target
= control target key end

     0   :  { %7 = vsyncpa [#allocation4], 0  ;;  %s896_s0 = inlined_call_operand.hbm [shape: f32[2,4,256], index: 0, kind: input, shape index: {}]   ;;  %s897_s1 = inlined_call_operand.hbm [shape: s32[2,1,256], index: 1, kind: input, shape index: {}]   ;;  %s898_s2 = inlined_call_operand.vmem [shape: s32[2,1,2,1], index: 2, kind: output, shape index: {}]  }
   0x1   :  { %9 = vsyncpa [#allocation4 + $0x1], 0 }
   0x2   :  { %10 = vsyncpa [#allocation6], 0 }
   0x3   :  { %12 = vsyncpa [#allocation6 + $0x1], 0  ;;  %s746_s9 = smov 0   ;;  %s748_s10 = smov 0  }
   0x4   :  { %s750_s11 = smov 0   ;;  %s752_s12 = smov 0  }
   0x5   :  { %s754_s13 = smov 0   ;;  %s756_s14 = smov 0  }
   0x6 LB: > { %s533_s15 = sadd.s32 4294967295, %s725_s14   ;;  %s37_s16 = sadd.s32 1, %s721_s13  ;;  %s725_s14 = sphi %s756_s14, %s18_s14   ;;  %s721_s13 = sphi %s754_s13, %s907_s13   ;;  %s717_s12 = sphi %s752_s12, %s906_s12   ;;  %s713_s11 = sphi %s750_s11, %s905_s11   ;;  %s709_s10 = sphi %s748_s10, %s904_s10   ;;  %s705_s9 = sphi %s746_s9, %s903_s9  }
   0x7   : > { %p39_p0 = scmp.ge.s32.totalorder %s37_s16, 2  ;;  %s52_s17 = sadd.s32 1, %s713_s11 }
   0x8   : > { %p59_p1 = scmp.ne.s32.totalorder %s713_s11, %s709_s10  ;;  %p60_p2 = scmp.eq.s32.totalorder %s725_s14, 0 }
   0x9   : > { %s909_s16 = smov (%p39_p0, %s37_s16), 0  ;;  %p65_p4 = scmp.ne.s32.totalorder %s709_s10, %s705_s9 }
   0xa   : > { %p782_p3 = por %p60_p2, %p59_p1  ;;  %s47_s19 = ssub.s32 %s721_s13, %s909_s16 }
   0xb   : > { %p66_p5 = scmp.eq.s32.totalorder %s533_s15, 0  ;;  %p50_p6 = scmp.eq.s32.totalorder %s47_s19, 0 }
   0xc   : > { %p563_p8 = scmp.lt.s32.totalorder %s725_s14, 2  ;;  %s798_s22 = sand.u32 1, %s713_s11  }
   0xd   : > { %p789_p7 = por %p66_p5, %p65_p4  ;;  %s550_s23 = sshll.u32 %s721_s13, 7 }
   0xe   : > { %s795_s21 = scalar_select %p50_p6, %s713_s11, %s52_s17  }
   0xf   : > { %s537_s24 = sshll.u32 %s798_s22, 3  ;;  %s166_s27 = scalar_lea.hbm %s896_s0, %s550_s23 }
  0x10   : > { %s155_s28 = scalar_lea.vmem [#allocation3], %s537_s24  ;;  %p807_p9 = pnand %p563_p8, %p782_p3 }
  0x11   : > { %s168_s29 = sshll.u32 %s155_s28, 4  ;;  %p543_p10 = scmp.ge.s32.totalorder %s725_s14, 1  ;;  %s169_s29 = int_to_ptr.vmem [resolvable:$true] %s168_s29 }
  0x12   : > { %p197_p11 = scmp.lt.s32.totalorder %s725_s14, 3  ;;  %s152_s3 = scalar_lea.sflag [#allocation4], %s798_s22 }
  0x13   : > { %p617_p12 = pneg %p807_p9  ;;  %s628_s4 = scalar_lea.vmem %s169_s29, 128 }
  0x14   : > { %p629_p13 = scmp.ne.s32.totalorder %s169_s29, %s628_s4  ;;  %s727_s5 = smov [#allocation3]  }
  0x15   : > { %s633_s6 = sshll.u32 %s727_s5, 4  ;;  %s634_s6 = int_to_ptr.vmem [resolvable:$false] %s633_s6 }
  0x16   : > { %p631_p0 = pnand %p629_p13, %p617_p12  ;;  %s635_s7 = scalar_lea.vmem %s634_s6, 256 }
  0x17   : > { %p636_p2 = scmp.lt.s32.totalorder %s169_s29, %s634_s6  ;;  %p637_p3 = scmp.lt.s32.totalorder %s635_s7, %s628_s4 }
  0x18   : > { %p632_p1 = pneg %p631_p0 }
  0x19   : > { %p638_p4 = por %p637_p3, %p636_p2 }
  0x1b   : > { %p639_p5 = pnand %p638_p4, %p632_p1 }
  0x1d   : > { %642 = shalt.err (!%p639_p5)
}
  0x1e   : > { %559 = dma.hbm_to_vmem [thread:$0]  (!%p807_p9), %s166_s27, 128, %s169_s29, %s152_s3  }
  0x1f   : > { %p825_p6 = pnand %p543_p10, %p197_p11  ;;  %s540_s9 = sshll.u32 %s798_s22, 1 }
  0x20   : > { %s551_s15 = sshll.u32 %s721_s13, 5  ;;  %s179_s23 = scalar_lea.vmem [#allocation5], %s540_s9 }
  0x21   : > { %s190_s19 = scalar_lea.hbm %s897_s1, %s551_s15  ;;  %s192_s24 = sshll.u32 %s179_s23, 4  ;;  %s193_s24 = int_to_ptr.vmem [resolvable:$true] %s192_s24 }
  0x22   : > { %s176_s25 = scalar_lea.sflag [#allocation6], %s798_s22  ;;  %s656_s26 = scalar_lea.vmem %s193_s24, 32 }
  0x23   : > { %p657_p8 = scmp.ne.s32.totalorder %s193_s24, %s656_s26  ;;  %s728_s27 = smov [#allocation5]  }
  0x24   : > { %s661_s28 = sshll.u32 %s728_s27, 4  ;;  %s662_s28 = int_to_ptr.vmem [resolvable:$false] %s661_s28 }
  0x25   : > { %p659_p13 = pnand %p657_p8, %p617_p12  ;;  %s663_s29 = scalar_lea.vmem %s662_s28, 64 }
  0x26   : > { %p664_p10 = scmp.lt.s32.totalorder %s193_s24, %s662_s28  ;;  %p665_p11 = scmp.lt.s32.totalorder %s663_s29, %s656_s26 }
  0x27   : > { %p660_p0 = pneg %p659_p13 }
  0x28   : > { %p666_p1 = por %p665_p11, %p664_p10 }
  0x2a   : > { %p667_p2 = pnand %p666_p1, %p660_p0 }
  0x2c   : > { %670 = shalt.err (!%p667_p2)
}
  0x2d   : > { %562 = dma.hbm_to_vmem [thread:$0]  (!%p807_p9), %s190_s19, 32, %s193_s24, %s176_s25  }
  0x2e   : > { %201 = sbr.rel (%p825_p6) target bundleno = 276 (0x114), region = 28  ;;  %s203_s22 = sand.u32 (!%p825_p6), 1, %s709_s10  }
  0x2f   : > { %s544_s3 = sshll.u32 (!%p825_p6), %s203_s22, 3  ;;  %s204_s4 = scalar_lea.sflag (!%p825_p6), [#allocation4], %s203_s22 }
  0x30   : > { %s207_s5 = scalar_lea.vmem (!%p825_p6), [#allocation3], %s544_s3 }
  0x33   : > { %696 = dma.done.wait (%p789_p7), %s204_s4, 128  }
  0x34   : > { %698 = vsyncadd (%p789_p7), %s204_s4, 4294967168  ;;  %s545_s6 = sshll.u32 %s203_s22, 1  ;;  %s213_s7 = scalar_lea.sflag [#allocation6], %s203_s22 }
  0x35   : > { %s216_s9 = scalar_lea.vmem [#allocation5], %s545_s6 }
  0x36   : > { %700 = dma.done.wait (%p789_p7), %s213_s7, 32  }
  0x37   : > { %702 = vsyncadd (%p789_p7), %s213_s7, 4294967264  ;;  %v266_v0 = vlaneseq  ;;  %v729_v1 = vmov 0   ;;  %v264_v5 = vld [vmem:[%s207_s5] sm:$0xff]  ;;  %v265_v6 = vld [vmem:[%s216_s9] sm:$0x3]  ;;  %vm283_vm0 = vcmask 1043456  }
  0x38   : > { %263 = vst [vmem:[#allocation2] sm:$0xf] %v729_v1  ;;  %v279_v9 = vcombine.high %v264_v5, %v264_v5  ;;  %vm344_vm10 = vcmp.ge.s32.totalorder %v265_v6, 0  ;;  %vm345_vm11 = vcmp.lt.s32.totalorder %v265_v6, 4  ;;  %v730_v48 = vmov 1983009808  }
  0x39   : > { %v852_v2 = vshrl.u32 %v266_v0, 7  ;;  %vm346_vm12 = vmand %vm344_vm10, %vm345_vm11  ;;  %v380_v49 = vunpack.c.l.s4 %v730_v48  ;;  %p252_p7 = scmp.lt.s32.totalorder %s717_s12, 1 }
  0x3a   : > { %v347_v39 = vsel %vm346_vm12, 1, %v729_v1 }
  0x3b   : > { %v270_v3 = vsub.s32 0, %v852_v2  ;;  %v274_v4 = vsub.s32 1, %v852_v2  ;;  %v381_v53 = vunpack.c.0.s8 %v380_v49  ;;  %s911_s12 = smov (!%p252_p7, %s717_s12), 1 }
  0x3c   : > { %s546_s20 = sshll.u32 %s911_s12, 1 }
  0x3d   : > { %v271_v7 = vrot.slane %v265_v6, %v270_v3  ;;  %v275_v8 = vrot.slane %v265_v6, %v274_v4  ;;  %v351_v42 = vrot.slane %v347_v39, %v270_v3  ;;  %v355_v45 = vrot.slane %v347_v39, %v274_v4  ;;  %s258_s15 = scalar_lea.vmem %s898_s2, %s546_s20 }
  0x3e   : > { %v384_v59 = vsub.s32 %v381_v53, %v852_v2 }
  0x3f   : > { %vm276_vm1 = vcmp.eq.s32.totalorder %v852_v2, %v271_v7  ;;  %vm277_vm2 = vcmp.eq.s32.totalorder %v852_v2, %v275_v8  ;;  %vm304_vm3 = vcmp.lt.s32.totalorder %v852_v2, %v271_v7  ;;  %vm305_vm4 = vcmp.lt.s32.totalorder %v852_v2, %v275_v8  ;;  %v377_v62 = vld [vmem:[#allocation2] sm:$0xf] }
  0x40   : > { %v281_v10 = vsel %vm276_vm1, %v264_v5, -inf  ;;  %v282_v11 = vsel %vm277_vm2, %v279_v9, -inf  ;;  %v306_v20 = vsel %vm304_vm3, 1, %v729_v1  ;;  %v307_v21 = vsel %vm305_vm4, 1, %v729_v1 }
  0x41   : > { %v284_v12 = vsel %vm283_vm0, %v281_v10, -inf  ;;  %v291_v13 = vsel %vm283_vm0, %v282_v11, -inf  ;;  %v308_v26 = vcombine.low %v306_v20, %v307_v21  ;;  %vm356_vm13 = vcmp.ne.s32.totalorder %v351_v42, 0 }
  0x42   : > { %v285_v14 = vrot.slane %v284_v12, 4  ;;  %v292_v15 = vrot.slane %v291_v13, 4 }
  0x43   : > { %vm309_vm5 = vcmp.ne.s32.totalorder %v308_v26, 0 }
  0x44   : > { %v286_v16 = vmax.f32 %v284_v12, %v285_v14  ;;  %v293_v17 = vmax.f32 %v291_v13, %v292_v15 }
  0x46   : > { %v287_v18 = vrot.slane %v286_v16, 2  ;;  %v294_v19 = vrot.slane %v293_v17, 2 }
  0x48   : > { %v288_v22 = vmax.f32 %v286_v16, %v287_v18  ;;  %v295_v23 = vmax.f32 %v293_v17, %v294_v19 }
  0x4a   : > { %v289_v24 = vrot.slane %v288_v22, 1  ;;  %v296_v25 = vrot.slane %v295_v23, 1 }
  0x4c   : > { %v290_v27 = vmax.f32 %v288_v22, %v289_v24  ;;  %v297_v28 = vmax.f32 %v295_v23, %v296_v25 }
  0x4e   : > { %v300_v29 = vcombine.low %v290_v27, %v297_v28 }
  0x50   : > { %vm302_vm6 = vcmp.gt.f32.partialorder %v264_v5, %v300_v29  ;;  %vm303_vm7 = vcmp.eq.f32.partialorder %v264_v5, %v300_v29 }
  0x51   : > { %vm310_vm8 = vmand %vm303_vm7, %vm309_vm5 }
  0x52   : > { %vm311_vm9 = vmor %vm302_vm6, %vm310_vm8  ;;  %vm374_vm6 = vcmask 1040384   ;;  %vm400_vm8 = vcmask 1041408  }
  0x53   : > { %v312_v30 = vsel %vm311_vm9, 1, %v729_v1  ;;  %vm416_vm9 = vcmask 1024  }
  0x54   : > { %v313_v31 = vcombine.high %v312_v30, %v312_v30  ;;  %v314_v32 = vsel %vm283_vm0, %v312_v30, 0 }
  0x55   : > { %v315_v33 = vrot.slane %v314_v32, 4 }
  0x56   : > { %v321_v34 = vsel %vm283_vm0, %v313_v31, 0  ;;  %vm357_vm0 = vcmp.ne.s32.totalorder %v355_v45, 0 }
  0x57   : > { %v316_v35 = vadd.s32 %v315_v33, %v314_v32  ;;  %v322_v36 = vrot.slane %v321_v34, 4 }
  0x59   : > { %v317_v37 = vrot.slane %v316_v35, 2  ;;  %v323_v38 = vadd.s32 %v322_v36, %v321_v34 }
  0x5b   : > { %v318_v40 = vadd.s32 %v317_v37, %v316_v35  ;;  %v324_v41 = vrot.slane %v323_v38, 2 }
  0x5d   : > { %v319_v43 = vrot.slane %v318_v40, 1  ;;  %v325_v44 = vadd.s32 %v324_v41, %v323_v38 }
  0x5f   : > { %v320_v46 = vadd.s32 %v319_v43, %v318_v40  ;;  %v326_v47 = vrot.slane %v325_v44, 1 }
  0x61   : > { %v327_v50 = vadd.s32 %v326_v47, %v325_v44  ;;  %vm360_vm14 = vcmp.lt.s32.totalorder %v320_v46, 1  ;;  %vm366_vm15 = vcmp.lt.s32.totalorder %v320_v46, 2 }
  0x62   : > { %vm362_vm1 = vmand %vm360_vm14, %vm356_vm13 }
  0x63   : > { %vm361_vm2 = vcmp.lt.s32.totalorder %v327_v50, 1  ;;  %vm367_vm3 = vcmp.lt.s32.totalorder %v327_v50, 2  ;;  %vm368_vm4 = vmand %vm366_vm15, %vm356_vm13  ;;  %v364_v51 = vsel %vm362_vm1, 1, %v729_v1 }
  0x64   : > { %vm363_vm5 = vmand %vm361_vm2, %vm357_vm0  ;;  %v370_v52 = vsel %vm368_vm4, 1, %v729_v1 }
  0x65   : > { %vm369_vm7 = vmand %vm367_vm3, %vm357_vm0  ;;  %v372_v54 = vrot.slane %v370_v52, 7  ;;  %v365_v55 = vsel %vm363_vm5, 1, %v729_v1 }
  0x66   : > { %v371_v56 = vsel %vm369_vm7, 1, %v729_v1 }
  0x67   : > { %v373_v57 = vrot.slane %v371_v56, 7  ;;  %v375_v58 = vsel %vm374_vm6, %v364_v51, %v372_v54 }
  0x69   : > { %v376_v60 = vsel %vm374_vm6, %v365_v55, %v373_v57 }
  0x6a   : > { %v378_v61 = vcombine.low %v375_v58, %v376_v60 }
  0x6c   : > { %v385_v63 = vrot.slane %v378_v61, %v384_v59 }
  0x6e   : > { %v386_v0 = vadd.s32 %v385_v63, %v377_v62 }
  0x70   : > { %387 = vst [vmem:[#allocation2] sm:$0xf] %v386_v0 }
  0x77   : > { %v547_v3 = vld.sshfl [vmem:[#allocation2] sm:$0x33 pattern:$0x76325410] }
  0x78   : > { %v399_v4 = vcombine.high %v547_v3, %v547_v3  ;;  %v401_v5 = vsel %vm400_vm8, %v547_v3, 0 }
  0x7a   : > { %v402_v6 = vsel %vm400_vm8, %v399_v4, 0 }
  0x7b   : > { %v403_v7 = vadd.s32 %v402_v6, %v401_v5 }
  0x7d   : > { %v405_v8 = vshrl.u32 %v403_v7, 16  ;;  %v404_v1 = vand.u32 65535, %v403_v7 }
  0x7f   : > { %v407_v9 = vcvt.s32.f32 %v405_v8  ;;  %v406_v10 = vcvt.s32.f32 %v404_v1 }
  0x81   : > { %410 = vadd.xlane.f32.xlu0 %v407_v9 }
  0x85   : > { %408 = vadd.xlane.f32.xlu0 %v406_v10 }
 0x10a   : > { %v411_v2 = vpop.xlane.xlu0 %410 }
 0x10b   : > { %v413_v11 = vcvt.f32.s32 %v411_v2 }
 0x10d   : > { %v414_v13 = vshll.u32 %v413_v11, 16 }
 0x10e   : > { %v409_v12 = vpop.xlane.xlu0 %408 }
 0x10f   : > { %v412_v14 = vcvt.f32.s32 %v409_v12 }
 0x111   : > { %v415_v15 = vadd.s32 %v414_v13, %v412_v14 }
 0x113   : > { %417 = vst.msk [vmem:[%s258_s15] sm:$0x3] %vm416_vm9, %v415_v15 }
 0x114 PF: > { %s18_s14 = sadd.s32 1, %s725_s14   ;;  %s903_s9 = smov %s709_s10 }
 0x115   : > { %p15_p9 = scmp.ge.s32.totalorder %s18_s14, 4   ;;  %s904_s10 = smov %s713_s11 }
 0x116   : > { %s905_s11 = smov %s795_s21  ;;  %s906_s12 = smov %s721_s13 }
 0x117   : > { %s907_s13 = smov %s909_s16  ;;  %17 = sbr.rel (!%p15_p9) target bundleno = 6 (0x6), region = 89 }
 0x11c   :  { %443 = vsyncpa [#allocation4], 1 }
 0x11d   :  { %445 = vsyncpa [#allocation4 + $0x1], 1 }
 0x11e   :  { %446 = vsyncpa [#allocation6], 1 }
 0x11f   :  { %448 = vsyncpa [#allocation6 + $0x1], 1 }

</bundles_post_ra>
